<compile_context>
chip_gen: v7x
topology: tpu7x:2x2x1
jax: 0.10.0
libtpu: 0.0.40
codegen_flags: <defaults>
</compile_context>

<pallas_src>
import jax
import jax.numpy as jnp
from jax.experimental import pallas as pl
from jax.experimental.pallas import tpu as pltpu


def _round_up(x, m):
    return ((x + m - 1) // m) * m


def _vmem_capacity_bytes():
    """Per-core VMEM capacity; conservative v7x default if the query fails."""
    try:
        cap = int(pltpu.get_tpu_info().vmem_capacity_bytes)
        if cap > 0:
            return cap
    except Exception:
        pass
    return 64 << 20  # v7x per-TC VMEM (most restrictive generation)


def onehot_dict_kernel(x_ref, dict_ref, o_ref):
    # x_ref: (tm, V), dict_ref: (V, Ep), o_ref: (tm, Ep)
    x = x_ref[...]                                            # (tm, V)
    v = x.shape[-1]
    iota = jax.lax.broadcasted_iota(jnp.int32, x.shape, 1)    # (tm, V)

    # First-max argmax, fully 2-D keepdims (no 1-D relayout):
    mx = jnp.max(x, axis=-1, keepdims=True)                   # (tm, 1)
    masked_iota = jnp.where(x == mx, iota, v)                 # (tm, V)
    idx = jnp.min(masked_iota, axis=-1, keepdims=True)        # (tm, 1)

    # One-hot gather via MXU matmul: onehot @ dictionary (f32 accumulate).
    onehot = (iota == idx).astype(dict_ref.dtype)             # (tm, V)
    out = jnp.dot(onehot, dict_ref[...], preferred_element_type=jnp.float32)
    o_ref[...] = out.astype(o_ref.dtype)


def one_hot_dictionary(x, dictionary):
    """x: (B, N, V) float; dictionary: (V, E) float. Returns (B, N, E)."""
    B, N, V = x.shape
    Vd, E = dictionary.shape
    assert V == Vd
    rows = B * N

    x_isize = jnp.dtype(x.dtype).itemsize
    d_isize = jnp.dtype(dictionary.dtype).itemsize

    # Lane-padded footprints (VMEM accounting only; arrays stay unpadded in HBM).
    Vl = _round_up(V, 128)
    El = _round_up(E, 128)

    # Pad the embedding axis only when V >> E (extra output bytes negligible,
    # keeps the output store an unmasked lane-dense vst).  Otherwise keep E.
    if E % 128 == 0 or V < 4 * E:
        Ep = E
    else:
        Ep = El

    vmem_cap = _vmem_capacity_bytes()
    budget = int(0.62 * vmem_cap)
    tm_cap = 1024 if vmem_cap >= (96 << 20) else 512

    # Dictionary is resident and single-buffered (pl.Buffered(1)) -> 1x footprint.
    dict_bytes = Vl * El * d_isize

    tm = tm_cap
    while tm > 8:
        need = (2 * tm * Vl * x_isize        # x tile, double-buffered
                + 2 * tm * El * d_isize      # out tile, double-buffered
                + dict_bytes                 # resident dictionary (1x)
                + 3 * tm * Vl * 4)           # iota(i32)+masked_iota(i32)+onehot(f32)
        if need <= budget:
            break
        tm //= 2
    # TODO(synk): for very large V where even tm=8 overflows VMEM (v7x), add a
    # second "arbitrary" grid axis over V-chunks with an online argmax and
    # chunked onehot @ dict_chunk accumulation instead of shrinking tm.

    # Keep at least 2 grid steps so both v7x TensorCores get work.
    tm = max(8, min(tm, _round_up(-(-rows // 2), 8)))

    grid = pl.cdiv(rows, tm)   # partial edge block is masked by Pallas

    need = (2 * tm * Vl * x_isize + 2 * tm * El * d_isize
            + dict_bytes + 3 * tm * Vl * 4)
    vmem_limit = int(min(int(0.9 * vmem_cap),
                         max(32 << 20, need + (need >> 2) + (4 << 20))))

    x2 = x.reshape(rows, V)                               # free: contiguous view
    dict_p = dictionary if Ep == E else jnp.pad(dictionary, ((0, 0), (0, Ep - E)))

    out = pl.pallas_call(
        onehot_dict_kernel,
        out_shape=jax.ShapeDtypeStruct((rows, Ep), dictionary.dtype),
        grid_spec=pltpu.PrefetchScalarGridSpec(
            num_scalar_prefetch=0,
            grid=(grid,),
            in_specs=[
                # Row tile of scores; vocab axis at full extent (no padding).
                pl.BlockSpec((tm, V), lambda i: (i, 0)),
                # Full dictionary, resident across the grid, single-buffered.
                pl.BlockSpec((Vd, Ep), lambda i: (0, 0),
                             pipeline_mode=pl.Buffered(1)),
            ],
            out_specs=pl.BlockSpec((tm, Ep), lambda i: (i, 0)),
        ),
        compiler_params=pltpu.CompilerParams(
            dimension_semantics=("parallel",),
            vmem_limit_bytes=vmem_limit,
        ),
    )(x2, dict_p)

    if Ep > E:
        out = out[:, :E]
    return out.reshape(B, N, E)


if __name__ == "__main__":
    # Small shapes consistent with the module's forward: x: (B, N, vocab_size)
    B, N, vocab_size, emb_size = 2, 8, 64, 32

    key = jax.random.PRNGKey(0)
    kx, kd = jax.random.split(key)

    # Deterministic "parameter" init: nn.Embedding default is N(0, 1)
    dictionary = jax.random.normal(kd, (vocab_size, emb_size), dtype=jnp.float32)
    x = jax.random.normal(kx, (B, N, vocab_size), dtype=jnp.float32)

    out = one_hot_dictionary(x, dictionary)
    out = jax.block_until_ready(out)

    # Reference check (plain JAX) to make sure semantics match
    tokens_ref = jnp.argmax(x, axis=-1)
    ref = jnp.take(dictionary, tokens_ref, axis=0)
    assert out.shape == (B, N, emb_size)
    assert jnp.allclose(out, ref, atol=1e-5), "mismatch vs reference"

    print("KERNEL_OK")
</pallas_src>

<mosaic_0001>
module attributes {stable_mosaic.version = 11 : i64} {
  func.func @onehot_dict_kernel(%arg0: i32, %arg1: memref<8x64xf32, #tpu.memory_space<vmem>>, %arg2: memref<64x32xf32, #tpu.memory_space<vmem>>, %arg3: memref<8x32xf32, #tpu.memory_space<vmem>>) attributes {dimension_semantics = [#tpu.dimension_semantics<parallel>], iteration_bounds = array<i64: 2>, scalar_prefetch = 0 : i64, scratch_operands = 0 : i64, tpu.core_type = #tpu.core_type<tc>, window_params = [{transform_indices = @transform_0, window_bounds = array<i64: 8, 64>}, {pipeline_mode = #tpu.pipeline_mode<synchronous>, transform_indices = @transform_1, window_bounds = array<i64: 64, 32>}, {transform_indices = @transform_2, window_bounds = array<i64: 8, 32>}]} {
    %c0 = arith.constant 0 : index
    %c0_0 = arith.constant 0 : index
    %0 = vector.load %arg1[%c0, %c0_0] : memref<8x64xf32, #tpu.memory_space<vmem>>, vector<8x64xf32>
    %1 = tpu.iota {dimensions = array<i32: 1>} : vector<8x64xi32>
    %cst = arith.constant dense<0xFF800000> : vector<8xf32>
    %2 = vector.multi_reduction <maximumf>, %0, %cst [1] : vector<8x64xf32> to vector<8xf32>
    %3 = vector.shape_cast %2 : vector<8xf32> to vector<8x1xf32>
    %4 = vector.broadcast %3 : vector<8x1xf32> to vector<8x64xf32>
    %5 = arith.cmpf oeq, %0, %4 : vector<8x64xf32>
    %c64_i32 = arith.constant 64 : i32
    %6 = vector.broadcast %c64_i32 : i32 to vector<8x64xi32>
    %7 = arith.select %5, %1, %6 : vector<8x64xi1>, vector<8x64xi32>
    %cst_1 = arith.constant dense<2147483647> : vector<8xi32>
    %8 = vector.multi_reduction <minsi>, %7, %cst_1 [1] : vector<8x64xi32> to vector<8xi32>
    %9 = vector.shape_cast %8 : vector<8xi32> to vector<8x1xi32>
    %10 = vector.broadcast %9 : vector<8x1xi32> to vector<8x64xi32>
    %11 = arith.cmpi eq, %1, %10 : vector<8x64xi32>
    %12 = arith.extui %11 : vector<8x64xi1> to vector<8x64xi32>
    %13 = arith.sitofp %12 : vector<8x64xi32> to vector<8x64xf32>
    %c0_2 = arith.constant 0 : index
    %c0_3 = arith.constant 0 : index
    %14 = vector.load %arg2[%c0_2, %c0_3] : memref<64x32xf32, #tpu.memory_space<vmem>>, vector<64x32xf32>
    %cst_4 = arith.constant dense<0.000000e+00> : vector<8x32xf32>
    %15 = tpu.matmul %13, %14, %cst_4 {dimension_numbers = #tpu.dot_dimension_numbers<[1], [0], [0], [1], [0, 0, 1, 1], [], []>} : vector<8x64xf32>, vector<64x32xf32>, vector<8x32xf32> -> vector<8x32xf32>
    %c0_5 = arith.constant 0 : index
    %c0_6 = arith.constant 0 : index
    %16 = vector.load %arg3[%c0_5, %c0_6] : memref<8x32xf32, #tpu.memory_space<vmem>>, vector<8x32xf32>
    tpu.vector_store %arg3[%c0_5, %c0_6], %15 {strides = array<i32>} : memref<8x32xf32, #tpu.memory_space<vmem>>, vector<8x32xf32>,
    return
  }
  func.func @transform_0(%arg0: i32) -> (i32, i32) {
    %c0_i32 = arith.constant 0 : i32
    %c0_i32_0 = arith.constant 0 : i32
    return %arg0, %c0_i32 : i32, i32
  }
  func.func @transform_1(%arg0: i32) -> (i32, i32) {
    %c0_i32 = arith.constant 0 : i32
    %c0_i32_0 = arith.constant 0 : i32
    %c0_i32_1 = arith.constant 0 : i32
    return %c0_i32, %c0_i32_0 : i32, i32
  }
  func.func @transform_2(%arg0: i32) -> (i32, i32) {
    %c0_i32 = arith.constant 0 : i32
    %c0_i32_0 = arith.constant 0 : i32
    return %arg0, %c0_i32 : i32, i32
  }
}

</mosaic_0001>

<bundles_post_ra>
// kernel: tpu_custom_call.1
= control target key start
LH: loop header
LB: loop body
LE: loop exit
PB: predicated region body
PF: predicated region fallthrough
CT: control target
= control target key end

     0   :  { %7 = vsyncpa [#allocation3], 0  ;;  %s626_s0 = inlined_call_operand.vmem [shape: f32[16,64], index: 0, kind: input, shape index: {}]   ;;  %s627_s1 = inlined_call_operand.vmem [shape: f32[64,32], index: 1, kind: input, shape index: {}]   ;;  %s628_s2 = inlined_call_operand.hbm [shape: f32[16,32], index: 2, kind: output, shape index: {}]  }
   0x1   :  { %9 = vsyncpa [#allocation3 + $0x1], 0  ;;  %s499_s9 = smov 0   ;;  %s501_s10 = smov 0  }
   0x2   :  { %s503_s11 = smov 0   ;;  %s505_s12 = smov 0  }
   0x3 LB: > { %s520_s13 = sadd.s32 4294967295, %s478_s12   ;;  %s322_s14 = sadd.s32 4294967294, %s478_s12   ;;  %s478_s12 = sphi %s505_s12, %s634_s12   ;;  %s474_s11 = sphi %s503_s11, %s633_s11   ;;  %s470_s10 = sphi %s501_s10, %s632_s10   ;;  %s466_s9 = sphi %s499_s9, %s631_s9  }
   0x4   : > { %s524_s15 = sadd.s32 1, %s478_s12   ;;  %s69_s16 = sadd.s32 1, %s474_s11 }
   0x5   : > { %s66_s17 = ssub.s32 %s478_s12, %s524_s15  ;;  %p79_p0 = scmp.ne.s32.totalorder %s474_s11, %s470_s10 }
   0x6   : > { %p67_p1 = scmp.eq.s32.totalorder %s66_s17, 0  ;;  %p80_p2 = scmp.eq.s32.totalorder %s520_s13, 1 }
   0x7   : > { %p85_p3 = scmp.ne.s32.totalorder %s470_s10, %s466_s9  ;;  %p86_p4 = scmp.eq.s32.totalorder %s322_s14, 1 }
   0x8   : > { %s535_s18 = scalar_select %p67_p1, %s474_s11, %s69_s16  }
   0x9   : > { %p537_p5 = por %p80_p2, %p79_p0  ;;  %p541_p6 = por %p86_p4, %p85_p3 }
   0xa   : > { %p325_p7 = scmp.ge.s32.totalorder %s478_s12, 1  ;;  %p114_p8 = scmp.lt.s32.totalorder %s478_s12, 3 }
   0xc   : > { %p115_p9 = pnand %p325_p7, %p114_p8 }
   0xd   : > { %p135_p10 = scmp.lt.s32.totalorder (!%p115_p9), %s520_s13, 1  ;;  %vm142_vm0 = vcmask (!%p115_p9), 523264   ;;  %v140_v2 = vlaneseq (!%p115_p9)  ;;  %v166_v9 = vld [vmem:[%s627_s1] sm:$0xff] (!%p115_p9)  ;;  %v167_v10 = vld [vmem:[%s627_s1 + $0x8] sm:$0xff] (!%p115_p9)  ;;  %v168_v11 = vld [vmem:[%s627_s1 + $0x10] sm:$0xff] (!%p115_p9)  ;;  %v480_v12 = vmov (!%p115_p9), 0.0|0.0  }
   0xe   : > { %118 = sbr.rel (%p115_p9) target bundleno = 694 (0x2b6), region = 28  ;;  %362 = vmatprep.subr.bf16.mxu0 (!%p115_p9), %v480_v12  ;;  %v363_v13 = vpack.c.bf16 (!%p115_p9), %v167_v10, %v166_v9  ;;  %v169_v14 = vld [vmem:[%s627_s1 + $0x18] sm:$0xff] (!%p115_p9)  ;;  %v170_v16 = vld [vmem:[%s627_s1 + $0x20] sm:$0xff] (!%p115_p9)  ;;  %v171_v17 = vld [vmem:[%s627_s1 + $0x28] sm:$0xff] (!%p115_p9)  ;;  %vm481_vm3 = vmmov (!%p115_p9), 0   ;;  %v482_v26 = vmov (!%p115_p9), 0.0  }
   0xf   : > { %v141_v3 = vand.u32 (!%p115_p9), 127, %v140_v2  ;;  %v366_v15 = vpack.c.bf16 (!%p115_p9), %v169_v14, %v168_v11  ;;  %v369_v18 = vpack.c.bf16 (!%p115_p9), %v171_v17, %v170_v16  ;;  %v172_v23 = vld [vmem:[%s627_s1 + $0x30] sm:$0xff] (!%p115_p9)  ;;  %v173_v24 = vld [vmem:[%s627_s1 + $0x38] sm:$0xff] (!%p115_p9)  ;;  %359 = vmatprep.mubr.msk.f32.mxu0 (!%p115_p9), %vm481_vm3, %v482_v26  ;;  %s132_s23 = sand.u32 (!%p115_p9), 1, %s470_s10   ;;  %vm247_vm5 = vcmask (!%p115_p9), 261120  }
  0x10   : > { %364 = vmatpush3.bf16.msra.mxu0 (!%p115_p9), %v363_v13  ;;  %v372_v25 = vpack.c.bf16 (!%p115_p9), %v173_v24, %v172_v23  ;;  %s326_s24 = sshll.u32 (!%p115_p9), %s132_s23, 3  ;;  %s250_s3 = scalar_lea.sflag (!%p115_p9), [#allocation3], %s132_s23 }
  0x11   : > { %365 = vmatprep.subr.bf16.mxu0 (!%p115_p9), %v480_v12  ;;  %s134_s26 = scalar_lea.vmem (!%p115_p9), [#allocation2], %s326_s24 }
  0x12   : > { %s263_s27 = sshll.u32 (!%p115_p9), %s134_s26, 4  ;;  %s586_s27 = int_to_ptr.vmem [resolvable:$true] %s263_s27 }
  0x13   : > { %s416_s4 = scalar_lea.vmem (!%p115_p9), %s586_s27, 128 }
  0x14   : > { %367 = vmatpush3.bf16.msra.mxu0 (!%p115_p9), %v366_v15  ;;  %p417_p11 = scmp.ne.s32.totalorder (!%p115_p9), %s586_s27, %s416_s4 }
  0x15   : > { %s136_s21 = scalar_select %p135_p10, %s520_s13, 1  ;;  %368 = vmatprep.subr.bf16.mxu0 %v480_v12 }
  0x16   : > { %p418_p12 = pnand %p417_p11, %p537_p5 }
  0x17   : > { %s327_s22 = sshll.u32 %s136_s21, 3 }
  0x18   : > { %s138_s25 = scalar_lea.vmem %s626_s0, %s327_s22  ;;  %370 = vmatpush3.bf16.msra.mxu0 %v369_v18  ;;  %p419_p13 = pneg %p418_p12 }
  0x19   : > { %v139_v0 = vld [vmem:[%s138_s25] sm:$0xff]  ;;  %371 = vmatprep.subr.bf16.mxu0 %v480_v12  ;;  %s331_s25 = sshll.u32 %s520_s13, 7  ;;  %s483_s13 = smov [#allocation2]  }
  0x1a   : > { %v143_v1 = vsel %vm142_vm0, %v139_v0, -inf  ;;  %s584_s30 = scalar_lea.hbm %s628_s2, %s331_s25  ;;  %s420_s5 = sshll.u32 %s483_s13, 4  ;;  %s421_s5 = int_to_ptr.vmem [resolvable:$false] %s420_s5 }
  0x1b   : > { %144 = vmax.xlane.f32.xlu0 %v143_v1  ;;  %s422_s6 = scalar_lea.vmem %s421_s5, 256  ;;  %p423_p0 = scmp.lt.s32.totalorder %s586_s27, %s421_s5 }
  0x1c   : > { %373 = vmatpush3.bf16.msra.mxu0 %v372_v25  ;;  %p424_p1 = scmp.lt.s32.totalorder %s422_s6, %s416_s4 }
  0x1e   : > { %p425_p2 = por %p424_p1, %p423_p0 }
  0x20   : > { %p426_p3 = pnand %p425_p2, %p419_p13 }
  0xa8   : > { %v145_v4 = vpop.xlane.xlu0 %144 }
  0xa9   : > { %vm146_vm1 = vcmp.eq.f32.partialorder %v139_v0, %v145_v4 }
  0xaa   : > { %v147_v5 = vsel %vm146_vm1, %v141_v3, 64 }
  0xab   : > { %v148_v6 = vsel %vm142_vm0, %v147_v5, 2147483647 }
  0xac   : > { %v150_v7 = vshra.s32 %v148_v6, 16  ;;  %v149_v19 = vand.u32 65535, %v148_v6 }
  0xae   : > { %v152_v8 = vcvt.s32.f32 %v150_v7  ;;  %v151_v21 = vcvt.s32.f32 %v149_v19 }
  0xb0   : > { %153 = vmin.xlane.f32.xlu0 %v152_v8 }
 0x13d   : > { %v154_v20 = vpop.xlane.xlu0 %153 }
 0x13e   : > { %vm155_vm2 = vcmp.eq.f32.partialorder %v152_v8, %v154_v20  ;;  %v160_v27 = vcvt.f32.s32 %v154_v20 }
 0x13f   : > { %v156_v22 = vsel %vm155_vm2, %v151_v21, inf }
 0x140   : > { %157 = vmin.xlane.f32.xlu1 %v156_v22  ;;  %v161_v29 = vshll.u32 %v160_v27, 16 }
 0x1cd   : > { %v158_v28 = vpop.xlane.xlu1 %157 }
 0x1ce   : > { %v159_v30 = vcvt.f32.s32 %v158_v28 }
 0x1d0   : > { %v162_v31 = vadd.s32 %v161_v29, %v159_v30 }
 0x1d2   : > { %vm163_vm4 = vcmp.eq.s32.totalorder %v141_v3, %v162_v31 }
 0x1d3   : > { %v328_v32 = vsel %vm163_vm4, 1.0, %v482_v26 }
 0x1d4   : > { %360 = vmatmul.mubr.msk.f32.vlgmr.msra.gmra.mrb[0].mxu0 %vm142_vm0, %v328_v32 }
 0x2a7   : > { %v243_v33 = vpop.f32.mrb[0].mxu0 }
 0x2a8   : > { %248 = vst.msk [vmem:[%s134_s26] sm:$0xff] %vm247_vm5, %v243_v33  ;;  %v361_v34 = vpop.f32.mrb[1].mxu0 }
 0x2a9   : > { %429 = shalt.err (!%p426_p3)
}
 0x2aa   : > { %s430_s7 = scalar_lea.hbm %s584_s30, 128  ;;  %s434_s16 = scalar_lea.hbm %s628_s2, 256 }
 0x2ab   : > { %p431_p4 = scmp.ne.s32.totalorder %s584_s30, %s430_s7  ;;  %p435_p9 = scmp.lt.u32.totalorder %s584_s30, %s628_s2 }
 0x2ac   : > { %p436_p10 = scmp.lt.u32.totalorder %s434_s16, %s430_s7  ;;  %p438_p12 = scmp.lt.u32.totalorder %s430_s7, %s584_s30 }
 0x2ad   : > { %p432_p7 = pnand %p431_p4, %p537_p5 }
 0x2ae   : > { %p437_p11 = por %p436_p10, %p435_p9 }
 0x2af   : > { %p433_p8 = pneg %p432_p7 }
 0x2b0   : > { %p439_p13 = por %p438_p12, %p437_p11 }
 0x2b2   : > { %p440_p0 = pnand %p439_p13, %p433_p8 }
 0x2b4   : > { %443 = shalt.err (!%p440_p0)
}
 0x2b5   : > { %374 = dma.vmem_to_hbm [thread:$0]  (%p537_p5), %s586_s27, 128, %s584_s30, %s250_s3  }
 0x2b6 PF: > { %p380_p1 = scmp.ge.s32.totalorder %s478_s12, 2  ;;  %s275_s22 = sand.u32 1, %s466_s9  }
 0x2b7   : > { %s276_s23 = scalar_lea.sflag [#allocation3], %s275_s22 }
 0x2b8   : > { %p377_p2 = pnand %p380_p1, %p541_p6 }
 0x2ba   : > { %461 = dma.done.wait (!%p377_p2), %s276_s23, 128  }
 0x2bb   : > { %463 = vsyncadd (!%p377_p2), %s276_s23, 4294967168  ;;  %p12_p3 = scmp.ge.s32.totalorder %s524_s15, 4   ;;  %s631_s9 = smov %s470_s10 }
 0x2bc   : > { %s632_s10 = smov %s474_s11  ;;  %s633_s11 = smov %s535_s18 }
 0x2bd   : > { %s634_s12 = smov %s524_s15  ;;  %14 = sbr.rel (!%p12_p3) target bundleno = 3 (0x3), region = 63 }
 0x2c4   :  { %281 = vsyncpa [#allocation3], 1 }
 0x2c5   :  { %283 = vsyncpa [#allocation3 + $0x1], 1 }

</bundles_post_ra>
